<compile_context>
chip_gen: v6e
topology: v6e:2x2x1
jax: 0.10.0
libtpu: 0.0.40
codegen_flags: <defaults>
</compile_context>

<pallas_src>
import functools

import jax
import jax.numpy as jnp
from jax import lax
from jax.experimental import pallas as pl
from jax.experimental.pallas import tpu as pltpu

FEAT = 20


def _fixed_hidden_mlp_kernel(x_ref, w1_ref, c1_ref, w2_ref, b2_ref,
                             out_ref, tot_ref, abs_ref, *, tile_b, batch):
    # x_ref:   (tile_b, 20) VMEM   batch tile
    # w1_ref:  (20, 20)     VMEM   fused  W_lin.T @ rand_weight
    # c1_ref:  (1, 20)      VMEM   fused  b_lin @ rand_weight + 1
    # w2_ref:  (20, 20)     VMEM   W_lin.T
    # b2_ref:  (1, 20)      VMEM   b_lin
    # out_ref: (1, 1)       VMEM   scalar result (written on last tile)
    # tot_ref/abs_ref: (1,1) VMEM scratch accumulators (sum, abs-sum)
    i = pl.program_id(0)

    @pl.when(i == 0)
    def _init():
        tot_ref[...] = jnp.zeros_like(tot_ref)
        abs_ref[...] = jnp.zeros_like(abs_ref)

    x = x_ref[...]
    # relu((x @ W_lin.T + b) @ rand_weight + 1) == relu(x @ W1 + c1)
    h2 = jnp.maximum(
        jnp.dot(x, w1_ref[...], preferred_element_type=jnp.float32)
        + c1_ref[...], 0.0)
    # Second application of the shared Linear.
    h3 = (jnp.dot(h2, w2_ref[...], preferred_element_type=jnp.float32)
          + b2_ref[...])

    if batch % tile_b:  # static: mask padded rows of the ragged final tile
        rows = i * tile_b + lax.broadcasted_iota(jnp.int32, (tile_b, 1), 0)
        h3 = jnp.where(rows < batch, h3, 0.0)

    # Halving the whole tensor halves both sums exactly (no under/overflow at
    # these magnitudes), so it suffices to carry the two scalars.
    tot_ref[...] += jnp.sum(h3, keepdims=True)
    abs_ref[...] += jnp.sum(jnp.abs(h3), keepdims=True)

    @pl.when(i == pl.num_programs(0) - 1)
    def _finalize():
        total = tot_ref[...]        # (1, 1)
        abs_sum = abs_ref[...]      # (1, 1), >= 0
        # while abs_sum > 1: /= 2   ==  multiply by 2**-n with n = smallest
        # integer such that abs_sum <= 2**n. Extract n from the f32 exponent.
        bits = pltpu.bitcast(abs_sum, jnp.int32)        # sign bit is 0
        exp = (bits >> 23) - 127                        # unbiased exponent
        frac = bits & jnp.int32(0x7FFFFF)
        n = exp + (frac != 0).astype(jnp.int32)         # ceil(log2), exact
        n = jnp.clip(n, 0, 252)                         # guard 0 / inf / NaN
        # Apply 2**-n as two exact power-of-two factors (each exponent stays
        # in the normal range) -> bit-identical to repeated halving.
        n1 = n >> 1
        n2 = n - n1
        s1 = pltpu.bitcast((jnp.int32(127) - n1) << 23, jnp.float32)
        s2 = pltpu.bitcast((jnp.int32(127) - n2) << 23, jnp.float32)
        out_ref[...] = total * s1 * s2


@functools.partial(jax.jit, static_argnames=("tile_b",))
def fixed_hidden_mlp(x, w_lin, b_lin, rand_weight, *, tile_b=512):
    """x: (B, 20) f32; w_lin: (20, 20) torch Linear weight (out, in);
    b_lin: (20,); rand_weight: (20, 20). Returns scalar f32 forward() value."""
    B = x.shape[0]
    if tile_b >= B:
        tile_b = B                         # single full-extent block
    else:
        tile_b = max(8, (tile_b // 8) * 8)  # sublane-aligned batch tiles
    grid = (pl.cdiv(B, tile_b),)

    # Fold Linear#1 into rand_weight once, XLA-side (removes one matmul from
    # the kernel's serial chain; also absorbs the weight transpose).
    w2 = w_lin.T                                        # (in, out)
    w1 = w2 @ rand_weight                               # (20, 20)
    c1 = (b_lin @ rand_weight + 1.0).reshape(1, FEAT)   # (1, 20)
    b2 = b_lin.reshape(1, FEAT)

    kernel = functools.partial(_fixed_hidden_mlp_kernel,
                               tile_b=tile_b, batch=B)

    out = pl.pallas_call(
        kernel,
        out_shape=jax.ShapeDtypeStruct((1, 1), jnp.float32),
        grid_spec=pltpu.PrefetchScalarGridSpec(
            num_scalar_prefetch=0,
            grid=grid,
            in_specs=[
                pl.BlockSpec((tile_b, FEAT), lambda i: (i, 0)),  # x tile
                pl.BlockSpec((FEAT, FEAT), lambda i: (0, 0)),    # W1 (fused)
                pl.BlockSpec((1, FEAT), lambda i: (0, 0)),       # c1 (fused)
                pl.BlockSpec((FEAT, FEAT), lambda i: (0, 0)),    # W_lin.T
                pl.BlockSpec((1, FEAT), lambda i: (0, 0)),       # b_lin
            ],
            out_specs=pl.BlockSpec((1, 1), lambda i: (0, 0)),
            scratch_shapes=[pltpu.VMEM((1, 1), jnp.float32),     # total
                            pltpu.VMEM((1, 1), jnp.float32)],    # abs-sum
        ),
        compiler_params=pltpu.CompilerParams(
            # Accumulators carry state across batch tiles -> "arbitrary".
            dimension_semantics=("arbitrary",),
        ),
    )(x, w1, c1, w2, b2)
    return out[0, 0]


def _reference(x, w_lin, b_lin, rand_weight):
    # Pure-JAX reference mirroring the PyTorch forward exactly (unfused).
    h = x @ w_lin.T + b_lin
    h = jnp.maximum(h @ rand_weight + 1.0, 0.0)
    h = h @ w_lin.T + b_lin
    h = lax.while_loop(lambda h: jnp.sum(jnp.abs(h)) > 1.0,
                       lambda h: h / 2.0, h)
    return jnp.sum(h)


if __name__ == "__main__":
    key = jax.random.PRNGKey(0)
    k_x, k_rw, k_w, k_b = jax.random.split(key, 4)

    B = 2
    x = jax.random.uniform(k_x, (B, FEAT), dtype=jnp.float32)

    # Deterministic parameter init (shapes from __init__):
    #   rand_weight ~ U[0, 1)  (torch.rand)
    #   Linear(20, 20): W, b ~ U(-1/sqrt(20), 1/sqrt(20))
    rand_weight = jax.random.uniform(k_rw, (FEAT, FEAT), dtype=jnp.float32)
    bound = 1.0 / jnp.sqrt(jnp.float32(FEAT))
    w_lin = jax.random.uniform(
        k_w, (FEAT, FEAT), minval=-bound, maxval=bound, dtype=jnp.float32
    )
    b_lin = jax.random.uniform(
        k_b, (FEAT,), minval=-bound, maxval=bound, dtype=jnp.float32
    )

    out = fixed_hidden_mlp(x, w_lin, b_lin, rand_weight)
    out = jax.block_until_ready(out)

    ref = jax.block_until_ready(_reference(x, w_lin, b_lin, rand_weight))
    assert jnp.allclose(out, ref, rtol=1e-5, atol=1e-5), (out, ref)

    print("KERNEL_OK")
</pallas_src>

<mosaic_0001>
module attributes {stable_mosaic.version = 11 : i64} {
  func.func @_fixed_hidden_mlp_kernel(%arg0: i32, %arg1: memref<2x20xf32, #tpu.memory_space<vmem>>, %arg2: memref<20x20xf32, #tpu.memory_space<vmem>>, %arg3: memref<1x20xf32, #tpu.memory_space<vmem>>, %arg4: memref<20x20xf32, #tpu.memory_space<vmem>>, %arg5: memref<1x20xf32, #tpu.memory_space<vmem>>, %arg6: memref<1x1xf32, #tpu.memory_space<vmem>>, %arg7: memref<1x1xf32, #tpu.memory_space<vmem>>, %arg8: memref<1x1xf32, #tpu.memory_space<vmem>>) attributes {dimension_semantics = [#tpu.dimension_semantics<arbitrary>], iteration_bounds = array<i64: 1>, scalar_prefetch = 0 : i64, scratch_operands = 2 : i64, tpu.core_type = #tpu.core_type<tc>, window_params = [{transform_indices = @transform_0, window_bounds = array<i64: 2, 20>}, {pipeline_mode = #tpu.pipeline_mode<synchronous>, transform_indices = @transform_1, window_bounds = array<i64: 20, 20>}, {pipeline_mode = #tpu.pipeline_mode<synchronous>, transform_indices = @transform_2, window_bounds = array<i64: 1, 20>}, {pipeline_mode = #tpu.pipeline_mode<synchronous>, transform_indices = @transform_3, window_bounds = array<i64: 20, 20>}, {pipeline_mode = #tpu.pipeline_mode<synchronous>, transform_indices = @transform_4, window_bounds = array<i64: 1, 20>}, {pipeline_mode = #tpu.pipeline_mode<synchronous>, transform_indices = @transform_5, window_bounds = array<i64: 1, 1>}]} {
    %c0_i32 = arith.constant 0 : i32
    %0 = arith.cmpi eq, %arg0, %c0_i32 : i32
    %1 = arith.extui %0 : i1 to i32
    %c0_i32_0 = arith.constant 0 : i32
    %2 = arith.cmpi ne, %1, %c0_i32_0 : i32
    scf.if %2 {
      %cst_24 = arith.constant 0.000000e+00 : f32
      %36 = vector.broadcast %cst_24 : f32 to vector<1x1xf32>
      %c0_25 = arith.constant 0 : index
      %c0_26 = arith.constant 0 : index
      %37 = vector.load %arg7[%c0_25, %c0_26] : memref<1x1xf32, #tpu.memory_space<vmem>>, vector<1x1xf32>
      tpu.vector_store %arg7[%c0_25, %c0_26], %36 {strides = array<i32>} : memref<1x1xf32, #tpu.memory_space<vmem>>, vector<1x1xf32>,
      %cst_27 = arith.constant 0.000000e+00 : f32
      %38 = vector.broadcast %cst_27 : f32 to vector<1x1xf32>
      %c0_28 = arith.constant 0 : index
      %c0_29 = arith.constant 0 : index
      %39 = vector.load %arg8[%c0_28, %c0_29] : memref<1x1xf32, #tpu.memory_space<vmem>>, vector<1x1xf32>
      tpu.vector_store %arg8[%c0_28, %c0_29], %38 {strides = array<i32>} : memref<1x1xf32, #tpu.memory_space<vmem>>, vector<1x1xf32>,
    } else {
    }
    %c0 = arith.constant 0 : index
    %c0_1 = arith.constant 0 : index
    %3 = vector.load %arg1[%c0, %c0_1] : memref<2x20xf32, #tpu.memory_space<vmem>>, vector<2x20xf32>
    %c0_2 = arith.constant 0 : index
    %c0_3 = arith.constant 0 : index
    %4 = vector.load %arg2[%c0_2, %c0_3] : memref<20x20xf32, #tpu.memory_space<vmem>>, vector<20x20xf32>
    %cst = arith.constant dense<0.000000e+00> : vector<2x20xf32>
    %5 = tpu.matmul %3, %4, %cst {dimension_numbers = #tpu.dot_dimension_numbers<[1], [0], [0], [1], [0, 0, 1, 1], [], []>} : vector<2x20xf32>, vector<20x20xf32>, vector<2x20xf32> -> vector<2x20xf32>
    %c0_4 = arith.constant 0 : index
    %c0_5 = arith.constant 0 : index
    %6 = vector.load %arg3[%c0_4, %c0_5] : memref<1x20xf32, #tpu.memory_space<vmem>>, vector<1x20xf32>
    %7 = vector.broadcast %6 : vector<1x20xf32> to vector<2x20xf32>
    %8 = arith.addf %5, %7 : vector<2x20xf32>
    %cst_6 = arith.constant 0.000000e+00 : f32
    %9 = vector.broadcast %cst_6 : f32 to vector<2x20xf32>
    %10 = arith.maximumf %8, %9 : vector<2x20xf32>
    %c0_7 = arith.constant 0 : index
    %c0_8 = arith.constant 0 : index
    %11 = vector.load %arg4[%c0_7, %c0_8] : memref<20x20xf32, #tpu.memory_space<vmem>>, vector<20x20xf32>
    %cst_9 = arith.constant dense<0.000000e+00> : vector<2x20xf32>
    %12 = tpu.matmul %10, %11, %cst_9 {dimension_numbers = #tpu.dot_dimension_numbers<[1], [0], [0], [1], [0, 0, 1, 1], [], []>} : vector<2x20xf32>, vector<20x20xf32>, vector<2x20xf32> -> vector<2x20xf32>
    %c0_10 = arith.constant 0 : index
    %c0_11 = arith.constant 0 : index
    %13 = vector.load %arg5[%c0_10, %c0_11] : memref<1x20xf32, #tpu.memory_space<vmem>>, vector<1x20xf32>
    %14 = vector.broadcast %13 : vector<1x20xf32> to vector<2x20xf32>
    %15 = arith.addf %12, %14 : vector<2x20xf32>
    %c0_12 = arith.constant 0 : index
    %c0_13 = arith.constant 0 : index
    %16 = vector.load %arg7[%c0_12, %c0_13] : memref<1x1xf32, #tpu.memory_space<vmem>>, vector<1x1xf32>
    %17 = vector.shape_cast %15 : vector<2x20xf32> to vector<1x2x20xf32>
    %cst_14 = arith.constant dense<0.000000e+00> : vector<1xf32>
    %18 = vector.multi_reduction <add>, %17, %cst_14 [1, 2] : vector<1x2x20xf32> to vector<1xf32>
    %19 = vector.shape_cast %18 : vector<1xf32> to vector<1x1x1xf32>
    %20 = vector.extract %19[0, 0, 0] : f32 from vector<1x1x1xf32>
    %21 = vector.broadcast %20 : f32 to vector<1x1xf32>
    %22 = arith.addf %16, %21 : vector<1x1xf32>
    %c0_15 = arith.constant 0 : index
    %c0_16 = arith.constant 0 : index
    %23 = vector.load %arg7[%c0_15, %c0_16] : memref<1x1xf32, #tpu.memory_space<vmem>>, vector<1x1xf32>
    tpu.vector_store %arg7[%c0_15, %c0_16], %22 {strides = array<i32>} : memref<1x1xf32, #tpu.memory_space<vmem>>, vector<1x1xf32>,
    %c0_17 = arith.constant 0 : index
    %c0_18 = arith.constant 0 : index
    %24 = vector.load %arg8[%c0_17, %c0_18] : memref<1x1xf32, #tpu.memory_space<vmem>>, vector<1x1xf32>
    %25 = math.absf %15 : vector<2x20xf32>
    %26 = vector.shape_cast %25 : vector<2x20xf32> to vector<1x2x20xf32>
    %cst_19 = arith.constant dense<0.000000e+00> : vector<1xf32>
    %27 = vector.multi_reduction <add>, %26, %cst_19 [1, 2] : vector<1x2x20xf32> to vector<1xf32>
    %28 = vector.shape_cast %27 : vector<1xf32> to vector<1x1x1xf32>
    %29 = vector.extract %28[0, 0, 0] : f32 from vector<1x1x1xf32>
    %30 = vector.broadcast %29 : f32 to vector<1x1xf32>
    %31 = arith.addf %24, %30 : vector<1x1xf32>
    %c0_20 = arith.constant 0 : index
    %c0_21 = arith.constant 0 : index
    %32 = vector.load %arg8[%c0_20, %c0_21] : memref<1x1xf32, #tpu.memory_space<vmem>>, vector<1x1xf32>
    tpu.vector_store %arg8[%c0_20, %c0_21], %31 {strides = array<i32>} : memref<1x1xf32, #tpu.memory_space<vmem>>, vector<1x1xf32>,
    %c0_i32_22 = arith.constant 0 : i32
    %33 = arith.cmpi eq, %arg0, %c0_i32_22 : i32
    %34 = arith.extui %33 : i1 to i32
    %c0_i32_23 = arith.constant 0 : i32
    %35 = arith.cmpi ne, %34, %c0_i32_23 : i32
    scf.if %35 {
      %c0_24 = arith.constant 0 : index
      %c0_25 = arith.constant 0 : index
      %36 = vector.load %arg7[%c0_24, %c0_25] : memref<1x1xf32, #tpu.memory_space<vmem>>, vector<1x1xf32>
      %c0_26 = arith.constant 0 : index
      %c0_27 = arith.constant 0 : index
      %37 = vector.load %arg8[%c0_26, %c0_27] : memref<1x1xf32, #tpu.memory_space<vmem>>, vector<1x1xf32>
      %38 = tpu.bitcast %37 : vector<1x1xf32> -> vector<1x1xi32>
      %c23_i32 = arith.constant 23 : i32
      %39 = vector.broadcast %c23_i32 : i32 to vector<1x1xi32>
      %40 = arith.shrsi %38, %39 : vector<1x1xi32>
      %c127_i32 = arith.constant 127 : i32
      %41 = vector.broadcast %c127_i32 : i32 to vector<1x1xi32>
      %42 = arith.subi %40, %41 : vector<1x1xi32>
      %c8388607_i32 = arith.constant 8388607 : i32
      %43 = vector.broadcast %c8388607_i32 : i32 to vector<1x1xi32>
      %44 = arith.andi %38, %43 : vector<1x1xi32>
      %c0_i32_28 = arith.constant 0 : i32
      %45 = vector.broadcast %c0_i32_28 : i32 to vector<1x1xi32>
      %46 = arith.cmpi ne, %44, %45 : vector<1x1xi32>
      %47 = arith.extui %46 : vector<1x1xi1> to vector<1x1xi32>
      %48 = arith.addi %42, %47 : vector<1x1xi32>
      %c0_i32_29 = arith.constant 0 : i32
      %c252_i32 = arith.constant 252 : i32
      %49 = vector.broadcast %c0_i32_29 : i32 to vector<1x1xi32>
      %50 = arith.maxsi %49, %48 : vector<1x1xi32>
      %51 = vector.broadcast %c252_i32 : i32 to vector<1x1xi32>
      %52 = arith.minsi %51, %50 : vector<1x1xi32>
      %c1_i32 = arith.constant 1 : i32
      %53 = vector.broadcast %c1_i32 : i32 to vector<1x1xi32>
      %54 = arith.shrsi %52, %53 : vector<1x1xi32>
      %55 = arith.subi %52, %54 : vector<1x1xi32>
      %c127_i32_30 = arith.constant 127 : i32
      %56 = vector.broadcast %c127_i32_30 : i32 to vector<1x1xi32>
      %57 = arith.subi %56, %54 : vector<1x1xi32>
      %c23_i32_31 = arith.constant 23 : i32
      %58 = vector.broadcast %c23_i32_31 : i32 to vector<1x1xi32>
      %59 = arith.shli %57, %58 : vector<1x1xi32>
      %60 = tpu.bitcast %59 : vector<1x1xi32> -> vector<1x1xf32>
      %c127_i32_32 = arith.constant 127 : i32
      %61 = vector.broadcast %c127_i32_32 : i32 to vector<1x1xi32>
      %62 = arith.subi %61, %55 : vector<1x1xi32>
      %c23_i32_33 = arith.constant 23 : i32
      %63 = vector.broadcast %c23_i32_33 : i32 to vector<1x1xi32>
      %64 = arith.shli %62, %63 : vector<1x1xi32>
      %65 = tpu.bitcast %64 : vector<1x1xi32> -> vector<1x1xf32>
      %66 = arith.mulf %36, %60 : vector<1x1xf32>
      %67 = arith.mulf %66, %65 : vector<1x1xf32>
      %c0_34 = arith.constant 0 : index
      %c0_35 = arith.constant 0 : index
      %68 = vector.load %arg6[%c0_34, %c0_35] : memref<1x1xf32, #tpu.memory_space<vmem>>, vector<1x1xf32>
      tpu.vector_store %arg6[%c0_34, %c0_35], %67 {strides = array<i32>} : memref<1x1xf32, #tpu.memory_space<vmem>>, vector<1x1xf32>,
    } else {
    }
    return
  }
  func.func @transform_0(%arg0: i32) -> (i32, i32) {
    %c0_i32 = arith.constant 0 : i32
    %c0_i32_0 = arith.constant 0 : i32
    return %arg0, %c0_i32 : i32, i32
  }
  func.func @transform_1(%arg0: i32) -> (i32, i32) {
    %c0_i32 = arith.constant 0 : i32
    %c0_i32_0 = arith.constant 0 : i32
    %c0_i32_1 = arith.constant 0 : i32
    return %c0_i32, %c0_i32_0 : i32, i32
  }
  func.func @transform_2(%arg0: i32) -> (i32, i32) {
    %c0_i32 = arith.constant 0 : i32
    %c0_i32_0 = arith.constant 0 : i32
    %c0_i32_1 = arith.constant 0 : i32
    return %c0_i32, %c0_i32_0 : i32, i32
  }
  func.func @transform_3(%arg0: i32) -> (i32, i32) {
    %c0_i32 = arith.constant 0 : i32
    %c0_i32_0 = arith.constant 0 : i32
    %c0_i32_1 = arith.constant 0 : i32
    return %c0_i32, %c0_i32_0 : i32, i32
  }
  func.func @transform_4(%arg0: i32) -> (i32, i32) {
    %c0_i32 = arith.constant 0 : i32
    %c0_i32_0 = arith.constant 0 : i32
    %c0_i32_1 = arith.constant 0 : i32
    return %c0_i32, %c0_i32_0 : i32, i32
  }
  func.func @transform_5(%arg0: i32) -> (i32, i32) {
    %c0_i32 = arith.constant 0 : i32
    %c0_i32_0 = arith.constant 0 : i32
    %c0_i32_1 = arith.constant 0 : i32
    return %c0_i32, %c0_i32_0 : i32, i32
  }
}

</mosaic_0001>

<bundles_post_ra>
// kernel: fixed_hidden_mlp.1
= control target key start
LH: loop header
LB: loop body
LE: loop exit
PB: predicated region body
PF: predicated region fallthrough
CT: control target
= control target key end

     0   :  { %vm43_vm0 = vcmask 1043456   ;;  %v339_v1 = vmov 0.0   ;;  %vm340_vm1 = vmmov 0   ;;  %s412_s0 = inlined_call_operand.vmem [shape: f32[2,20], index: 0, kind: input, shape index: {}]   ;;  %s413_s1 = inlined_call_operand.vmem [shape: f32[20,20], index: 1, kind: input, shape index: {}]   ;;  %s414_s2 = inlined_call_operand.vmem [shape: f32[1,20], index: 2, kind: input, shape index: {}]   ;;  %s415_s3 = inlined_call_operand.vmem [shape: f32[20,20], index: 3, kind: input, shape index: {}]   ;;  %s416_s4 = inlined_call_operand.vmem [shape: f32[1,20], index: 4, kind: input, shape index: {}]   ;;  %s417_s5 = inlined_call_operand.hbm [shape: f32[1,1], index: 5, kind: output, shape index: {}]  }
   0x1   :  { %v31_v0 = vld [vmem:[%s413_s1 + $0x10] sm:$0xf]  ;;  %291 = vmatprep.subr.mxu0 %v339_v1  ;;  %v30_v2 = vld [vmem:[%s413_s1 + $0x8] sm:$0xff]  ;;  %300 = vmatprep.subr.mxu1 %v339_v1 }
   0x2   :  { %292 = vmatpush3.msk.msra.mxu0 %vm43_vm0, %v31_v0  ;;  %297 = vmatprep.mubr.msk.f32.mxu0 %vm340_vm1, %v339_v1 }
   0x3   :  { %10 = vsyncpa [#allocation5], 0  ;;  %293 = vmatprep.subr.mxu0 %v339_v1  ;;  %v29_v3 = vld [vmem:[%s413_s1] sm:$0xff]  ;;  %306 = vmatprep.mubr.msk.f32.mxu1 %vm340_vm1, %v339_v1  ;;  %vm39_vm2 = vcmask 162816   ;;  %v120_v5 = vld [vmem:[%s415_s3 + $0x10] sm:$0xf] }
   0x4   :  { %294 = vmatpush3.msra.mxu0 %v30_v2  ;;  %v28_v4 = vld [vmem:[%s412_s0] sm:$0x3]  ;;  %301 = vmatpush3.msk.msra.mxu1 %vm43_vm0, %v120_v5  ;;  %v119_v6 = vld [vmem:[%s415_s3 + $0x8] sm:$0xff]  ;;  %vm205_vm3 = vcmask 156672   ;;  %vm25_vm4 = vcmask 0   ;;  %v341_v44 = vmov 0  }
   0x5   :  { %295 = vmatprep.subr.mxu0 %v339_v1  ;;  %302 = vmatprep.subr.mxu1 %v339_v1  ;;  %v118_v7 = vld [vmem:[%s415_s3] sm:$0xff]  ;;  %26 = vst.msk [vmem:[#allocation2] sm:$0x1] %vm25_vm4, %v339_v1  ;;  %27 = vst.msk [vmem:[#allocation3] sm:$0x1] %vm25_vm4, %v339_v1 }
   0x6   :  { %296 = vmatpush3.msra.mxu0 %v29_v3  ;;  %303 = vmatpush3.msra.mxu1 %v119_v6  ;;  %v276_v8 = vld [vmem:[%s414_s2] ss:$0 sm:$0xff] }
   0x7   :  { %298 = vmatmul.mubr.msk.f32.vlgmr.msra.gmra.mxu0 %vm39_vm2, %v28_v4  ;;  %304 = vmatprep.subr.mxu1 %v339_v1  ;;  %v279_v13 = vld [vmem:[%s416_s4] ss:$0 sm:$0xff]  ;;  %s342_s4 = smov [#allocation4]  }
   0x8   :  { %305 = vmatpush3.msra.mxu1 %v118_v7  ;;  %s268_s9 = sshll.u32 %s342_s4, 4  ;;  %s269_s9 = int_to_ptr.vmem [resolvable:$true] %s268_s9 }
   0x9   :  { %s317_s10 = scalar_lea.vmem %s269_s9, 16  ;;  %s321_s11 = scalar_lea.vmem %s269_s9, 32 }
   0xa   :  { %p318_p0 = scmp.ne.s32.totalorder %s269_s9, %s317_s10  ;;  %p322_p1 = scmp.lt.s32.totalorder %s269_s9, %s269_s9 }
   0xb   :  { %p323_p2 = scmp.lt.s32.totalorder %s321_s11, %s317_s10 }
   0xc   :  { %v204_v34 = vld [vmem:[#allocation2] sm:$0x1]  ;;  %v220_v37 = vld [vmem:[#allocation3] sm:$0x1] }
   0xd   :  { %p324_p3 = por %p323_p2, %p322_p1 }
   0xf   :  { %p325_p4 = pnand %p324_p3, %p318_p0 }
  0xc7   :  { %v113_v9 = vpop.f32.mrf.mxu0 }
  0xc8   :  { %v114_v10 = vadd.f32 %v276_v8, %v113_v9 }
  0xc9   :  { %v299_v11 = vpop.f32.mrf.mxu0 }
  0xca   :  { %v117_v12 = vmax.f32 %v114_v10, 0.0 }
  0xcc   :  { %307 = vmatmul.mubr.msk.f32.vlgmr.msra.gmra.mxu1 %vm39_vm2, %v117_v12 }
 0x18c   :  { %v200_v14 = vpop.f32.mrf.mxu1 }
 0x18d   :  { %v201_v15 = vadd.f32 %v279_v13, %v200_v14 }
 0x18e   :  { %v308_v16 = vpop.f32.mrf.mxu1 }
 0x18f   :  { %v206_v17 = vsel %vm205_vm3, %v201_v15, 0.0  ;;  %v221_v18 = vand.u32 2147483647, %v201_v15 }
 0x190   :  { %207 = vadd.xlane.f32.xlu0 %v206_v17 }
 0x191   :  { %v222_v19 = vsel %vm205_vm3, %v221_v18, 0.0 }
 0x194   :  { %223 = vadd.xlane.f32.xlu0 %v222_v19 }
 0x219   :  { %v208_v20 = vpop.xlane.xlu0 %207 }
 0x21a   :  { %v209_v21 = vrot.slane %v208_v20, 4 }
 0x21c   :  { %v210_v22 = vadd.f32 %v209_v21, %v208_v20 }
 0x21d   :  { %v224_v23 = vpop.xlane.xlu0 %223 }
 0x21e   :  { %v211_v24 = vrot.slane %v210_v22, 2  ;;  %v225_v25 = vrot.slane %v224_v23, 4 }
 0x220   :  { %v226_v26 = vadd.f32 %v225_v25, %v224_v23  ;;  %v212_v27 = vadd.f32 %v211_v24, %v210_v22 }
 0x222   :  { %v227_v28 = vrot.slane %v226_v26, 2  ;;  %v213_v29 = vrot.slane %v212_v27, 1 }
 0x224   :  { %v228_v30 = vadd.f32 %v227_v28, %v226_v26  ;;  %v214_v31 = vadd.f32 %v213_v29, %v212_v27 }
 0x226   :  { %309 = vpush %v214_v31  ;;  %v229_v32 = vrot.slane %v228_v30, 1 }
 0x228   :  { %v230_v33 = vadd.f32 %v229_v32, %v228_v30 }
 0x22a   :  { %311 = vpush %v230_v33 }
 0x257   :  { %s310_s2 = spop %309 }
 0x258   :  { %v216_v35 = vstv %s310_s2 }
 0x259   :  { %v217_v36 = vadd.f32 %v216_v35, %v204_v34 }
 0x25b   :  { %219 = vst.msk [vmem:[#allocation2] sm:$0x1] %vm25_vm4, %v217_v36  ;;  %s312_s3 = spop %311 }
 0x25c   :  { %v232_v38 = vstv %s312_s3 }
 0x25d   :  { %v233_v39 = vadd.f32 %v232_v38, %v220_v37 }
 0x25f   :  { %234 = vst.msk [vmem:[#allocation3] sm:$0x1] %vm25_vm4, %v233_v39 }
 0x262   :  { %v238_v54 = vld [vmem:[#allocation2] sm:$0x1] }
 0x266   :  { %v239_v40 = vld [vmem:[#allocation3] sm:$0x1] }
 0x267   :  { %v241_v41 = vshra.s32 %v239_v40, 23  ;;  %v243_v42 = vand.u32 8388607, %v239_v40 }
 0x269   :  { %v282_v43 = vadd.s32 4294967169, %v241_v41  ;;  %vm244_vm5 = vcmp.ne.s32.totalorder %v243_v42, 0 }
 0x26a   :  { %v245_v45 = vsel %vm244_vm5, 1, %v341_v44 }
 0x26b   :  { %v246_v46 = vadd.s32 %v282_v43, %v245_v45 }
 0x26d   :  { %vm247_vm6 = vcmp.gt.s32.totalorder %v246_v46, 0 }
 0x26e   :  { %v248_v47 = vsel %vm247_vm6, %v246_v46, 0 }
 0x26f   :  { %vm249_vm7 = vcmp.lt.s32.totalorder %v248_v47, 252 }
 0x270   :  { %v250_v48 = vsel %vm249_vm7, %v248_v47, 252 }
 0x271   :  { %v251_v49 = vshra.s32 %v250_v48, 1 }
 0x273   :  { %v252_v50 = vsub.s32 %v250_v48, %v251_v49  ;;  %v253_v51 = vsub.s32 127, %v251_v49 }
 0x275   :  { %v254_v52 = vshll.u32 %v253_v51, 23  ;;  %v256_v53 = vsub.s32 127, %v252_v50 }
 0x277   :  { %v257_v55 = vshll.u32 %v256_v53, 23  ;;  %v259_v56 = vmul.f32 %v254_v52, %v238_v54 }
 0x279   :  { %v260_v57 = vmul.f32 %v259_v56, %v257_v55 }
 0x27b   :  { %261 = vst.msk [vmem:[#allocation4] sm:$0x1] %vm25_vm4, %v260_v57 }
 0x27c   :  { %328 = shalt.err (!%p325_p4)
}
 0x27d   :  { %271 = dma.vmem_to_hbm [thread:$0]  %s269_s9, 16, %s417_s5, [#allocation5]  }
 0x27e   :  { %337 = dma.done.wait [#allocation5], 16  }
 0x27f   :  { %338 = vsyncadd [#allocation5], 4294967280 }
 0x280   :  { %275 = vsyncpa [#allocation5], 1 }

</bundles_post_ra>
